<compile_context>
chip_gen: v5e
topology: v5e:2x2
jax: 0.10.0
libtpu: 0.0.40
codegen_flags: <defaults>
</compile_context>

<pallas_src>
import jax
import jax.numpy as jnp
from jax.experimental import pallas as pl
from jax.experimental.pallas import tpu as pltpu

EPS = 1e-5
VMEM_LIMIT = 32 * 1024 * 1024  # explicit, safe on v5e/v6e/v7x; usage is tiny


# ----------------------------- kernel bodies ------------------------------ #

def _stats_kernel(x_ref, psum_ref, psumsq_ref):
    """Per-sample, per-channel sum and sum-of-squares (lane reduction)."""
    x = x_ref[0]                                            # (C, L) f32
    psum_ref[0] = jnp.sum(x, axis=1, keepdims=True)         # (C, 1)
    psumsq_ref[0] = jnp.sum(x * x, axis=1, keepdims=True)   # (C, 1)


def _bn_swish_conv(a, scale, shift, w_cat, cb):
    """BN (affine pre-folded) -> Swish -> Conv1d(k=3, pad=1) on one (C, L) tile.

    Conv is a single tap-fused (C, 3C) @ (3C, L) matmul: bf16 operands,
    f32 accumulation.  Shifted taps come from XLU rolls + edge masking.
    """
    C, L = a.shape
    a = a * scale + shift                       # BatchNorm (stats pre-folded)
    a = a * jax.nn.sigmoid(a)                   # Swish, f32 (VPU + EUP)
    lane = jax.lax.broadcasted_iota(jnp.int32, (C, L), 1)
    a_prev = jnp.where(lane == 0, 0.0, pltpu.roll(a, 1, 1))           # a[l-1]
    a_next = jnp.where(lane == L - 1, 0.0, pltpu.roll(a, L - 1, 1))   # a[l+1]
    stacked = jnp.concatenate([a_prev, a, a_next], axis=0)            # (3C, L)
    y = jnp.dot(w_cat, stacked.astype(jnp.bfloat16),
                preferred_element_type=jnp.float32)
    return y + cb                                # conv bias, f32


def _apply1_kernel(x_ref, scale_ref, shift_ref, w_ref, cb_ref,
                   h_ref, psum_ref, psumsq_ref):
    y = _bn_swish_conv(x_ref[0], scale_ref[...], shift_ref[...],
                       w_ref[...], cb_ref[...])
    h_ref[0] = y
    # partial statistics of h1 for BN2 (L reduced here, N reduced in JAX glue)
    psum_ref[0] = jnp.sum(y, axis=1, keepdims=True)
    psumsq_ref[0] = jnp.sum(y * y, axis=1, keepdims=True)


def _apply2_kernel(x_ref, h_ref, scale_ref, shift_ref, w_ref, cb_ref, o_ref):
    y = _bn_swish_conv(h_ref[0], scale_ref[...], shift_ref[...],
                       w_ref[...], cb_ref[...])
    o_ref[0] = x_ref[0] + 0.1 * y                # residual


# ------------------------------ pallas calls ------------------------------ #

def _compiler_params():
    return pltpu.CompilerParams(
        dimension_semantics=("parallel",),       # batch axis -> both TCs on v7x
        vmem_limit_bytes=VMEM_LIMIT)


def _act_spec(C, L):
    return pl.BlockSpec((1, C, L), lambda n: (n, 0, 0))


def _stat_spec(C):
    return pl.BlockSpec((1, C, 1), lambda n: (n, 0, 0))


def _const_spec(shape):
    return pl.BlockSpec(shape, lambda n: (0,) * len(shape))


def _stats_call(x):
    N, C, L = x.shape
    return pl.pallas_call(
        _stats_kernel,
        grid=(N,),
        in_specs=[_act_spec(C, L)],
        out_specs=(_stat_spec(C), _stat_spec(C)),
        out_shape=(jax.ShapeDtypeStruct((N, C, 1), jnp.float32),
                   jax.ShapeDtypeStruct((N, C, 1), jnp.float32)),
        compiler_params=_compiler_params(),
        cost_estimate=pl.CostEstimate(
            flops=3 * N * C * L, transcendentals=0,
            bytes_accessed=4 * (N * C * L + 2 * N * C)),
    )(x)


def _apply1_call(x, scale, shift, w_cat, cb):
    N, C, L = x.shape
    return pl.pallas_call(
        _apply1_kernel,
        grid=(N,),
        in_specs=[_act_spec(C, L),
                  _const_spec((C, 1)), _const_spec((C, 1)),
                  _const_spec((C, 3 * C)), _const_spec((C, 1))],
        out_specs=(_act_spec(C, L), _stat_spec(C), _stat_spec(C)),
        out_shape=(jax.ShapeDtypeStruct((N, C, L), jnp.float32),
                   jax.ShapeDtypeStruct((N, C, 1), jnp.float32),
                   jax.ShapeDtypeStruct((N, C, 1), jnp.float32)),
        compiler_params=_compiler_params(),
        cost_estimate=pl.CostEstimate(
            flops=2 * N * L * C * 3 * C + 12 * N * C * L,
            transcendentals=N * C * L,
            bytes_accessed=4 * (2 * N * C * L + 2 * N * C) + 2 * 3 * C * C),
    )(x, scale, shift, w_cat, cb)


def _apply2_call(x, h1, scale, shift, w_cat, cb):
    N, C, L = x.shape
    return pl.pallas_call(
        _apply2_kernel,
        grid=(N,),
        in_specs=[_act_spec(C, L), _act_spec(C, L),
                  _const_spec((C, 1)), _const_spec((C, 1)),
                  _const_spec((C, 3 * C)), _const_spec((C, 1))],
        out_specs=_act_spec(C, L),
        out_shape=jax.ShapeDtypeStruct((N, C, L), jnp.float32),
        compiler_params=_compiler_params(),
        cost_estimate=pl.CostEstimate(
            flops=2 * N * L * C * 3 * C + 14 * N * C * L,
            transcendentals=N * C * L,
            bytes_accessed=4 * 3 * N * C * L + 2 * 3 * C * C),
    )(x, h1, scale, shift, w_cat, cb)


# -------------------------------- wrapper ---------------------------------- #

@jax.jit
def encoder_residual_block(x, g1, bt1, w1, cb1, g2, bt2, w2, cb2):
    """x: (N, C, L) f32.  Conv weights w*: (C_out, C_in, 3) as in PyTorch."""
    N, C, L = x.shape
    cnt = float(N * L)

    def fold_bn(psum, psumsq, g, bt):
        # combine per-sample partial sums -> batch mean / rstd, fold BN affine
        mean = jnp.sum(psum, axis=0) / cnt                       # (C, 1)
        var = jnp.sum(psumsq, axis=0) / cnt - mean * mean        # biased (PyTorch)
        rstd = jax.lax.rsqrt(var + EPS)
        scale = rstd * g.reshape(C, 1)
        shift = bt.reshape(C, 1) - mean * scale
        return scale, shift

    def fold_w(w):
        # (C_out, C_in, 3) -> (C_out, 3*C_in) bf16; taps k=0,1,2 hit x[l-1],x[l],x[l+1]
        return jnp.concatenate([w[:, :, 0], w[:, :, 1], w[:, :, 2]],
                               axis=1).astype(jnp.bfloat16)

    # stage 0: BN1 batch statistics of x
    ps1, pss1 = _stats_call(x)
    scale1, shift1 = fold_bn(ps1, pss1, g1, bt1)

    # stage 1: h1 = Conv1(Swish(BN1(x)))  (+ partial BN2 statistics of h1)
    h1, ps2, pss2 = _apply1_call(x, scale1, shift1, fold_w(w1), cb1.reshape(C, 1))
    scale2, shift2 = fold_bn(ps2, pss2, g2, bt2)

    # stage 2: out = x + 0.1 * Conv2(Swish(BN2(h1)))
    return _apply2_call(x, h1, scale2, shift2, fold_w(w2), cb2.reshape(C, 1))


# ------------------------------- reference --------------------------------- #

def reference(x, g1, bt1, w1, cb1, g2, bt2, w2, cb2):
    """Pure-JAX reference matching PyTorch training-mode semantics (f32)."""
    def bn(h, g, b):
        mean = jnp.mean(h, axis=(0, 2), keepdims=True)
        var = jnp.var(h, axis=(0, 2), keepdims=True)   # biased
        return (h - mean) / jnp.sqrt(var + EPS) * g.reshape(1, -1, 1) \
               + b.reshape(1, -1, 1)

    def swish(h):
        return h * jax.nn.sigmoid(h)

    def conv(h, w, b):
        y = jax.lax.conv_general_dilated(
            h, w, window_strides=(1,), padding=[(1, 1)],
            dimension_numbers=("NCH", "OIH", "NCH"),
            precision=jax.lax.Precision.HIGHEST)
        return y + b.reshape(1, -1, 1)

    h = conv(swish(bn(x, g1, bt1)), w1, cb1)
    h = conv(swish(bn(h, g2, bt2)), w2, cb2)
    return x + 0.1 * h


if __name__ == "__main__":
    N, C, L = 4, 16, 256
    key = jax.random.PRNGKey(0)
    kx, kw1, kb1, kw2, kb2, kg1, kbt1, kg2, kbt2 = jax.random.split(key, 9)

    x = jax.random.normal(kx, (N, C, L), dtype=jnp.float32)

    # BatchNorm affine params (PyTorch init is 1/0; perturb for a real test)
    g1 = 1.0 + 0.1 * jax.random.normal(kg1, (C,), dtype=jnp.float32)
    bt1 = 0.1 * jax.random.normal(kbt1, (C,), dtype=jnp.float32)
    g2 = 1.0 + 0.1 * jax.random.normal(kg2, (C,), dtype=jnp.float32)
    bt2 = 0.1 * jax.random.normal(kbt2, (C,), dtype=jnp.float32)

    # Conv1d(dim, dim, kernel_size=3) params, kaiming-like scale
    scale = (1.0 / (C * 3)) ** 0.5
    w1 = scale * jax.random.normal(kw1, (C, C, 3), dtype=jnp.float32)
    cb1 = scale * jax.random.normal(kb1, (C,), dtype=jnp.float32)
    w2 = scale * jax.random.normal(kw2, (C, C, 3), dtype=jnp.float32)
    cb2 = scale * jax.random.normal(kb2, (C,), dtype=jnp.float32)

    out = encoder_residual_block(x, g1, bt1, w1, cb1, g2, bt2, w2, cb2)
    out = jax.block_until_ready(out)

    ref = reference(x, g1, bt1, w1, cb1, g2, bt2, w2, cb2)
    assert out.shape == (N, C, L) and out.dtype == jnp.float32
    # kernel uses bf16 MXU operands (f32 accumulation); reference is full f32
    err = jnp.max(jnp.abs(out - ref))
    assert jnp.allclose(out, ref, atol=5e-3, rtol=5e-3), f"max abs err {err}"

    print("KERNEL_OK")
</pallas_src>

<mosaic_0001>
module attributes {stable_mosaic.version = 11 : i64} {
  func.func @_stats_kernel(%arg0: i32, %arg1: memref<1x16x256xf32, #tpu.memory_space<vmem>>, %arg2: memref<1x16x1xf32, #tpu.memory_space<vmem>>, %arg3: memref<1x16x1xf32, #tpu.memory_space<vmem>>) attributes {dimension_semantics = [#tpu.dimension_semantics<parallel>], iteration_bounds = array<i64: 4>, scalar_prefetch = 0 : i64, scratch_operands = 0 : i64, tpu.core_type = #tpu.core_type<tc>, window_params = [{transform_indices = @transform_0, window_bounds = array<i64: 1, 16, 256>}, {transform_indices = @transform_1, window_bounds = array<i64: 1, 16, 1>}, {transform_indices = @transform_2, window_bounds = array<i64: 1, 16, 1>}]} {
    %c0 = arith.constant 0 : index
    %c0_0 = arith.constant 0 : index
    %c0_1 = arith.constant 0 : index
    %0 = vector.load %arg1[%c0, %c0_0, %c0_1] : memref<1x16x256xf32, #tpu.memory_space<vmem>>, vector<1x16x256xf32>
    %1 = vector.shape_cast %0 : vector<1x16x256xf32> to vector<16x256xf32>
    %cst = arith.constant dense<0.000000e+00> : vector<16xf32>
    %2 = vector.multi_reduction <add>, %1, %cst [1] : vector<16x256xf32> to vector<16xf32>
    %3 = vector.shape_cast %2 : vector<16xf32> to vector<16x1xf32>
    %c0_2 = arith.constant 0 : index
    %c0_3 = arith.constant 0 : index
    %c0_4 = arith.constant 0 : index
    %4 = vector.load %arg2[%c0_2, %c0_3, %c0_4] : memref<1x16x1xf32, #tpu.memory_space<vmem>>, vector<1x16x1xf32>
    %5 = vector.shape_cast %4 : vector<1x16x1xf32> to vector<16x1xf32>
    %6 = vector.shape_cast %3 : vector<16x1xf32> to vector<1x16x1xf32>
    tpu.vector_store %arg2[%c0_2, %c0_3, %c0_4], %6 {strides = array<i32>} : memref<1x16x1xf32, #tpu.memory_space<vmem>>, vector<1x16x1xf32>,
    %7 = arith.mulf %1, %1 : vector<16x256xf32>
    %cst_5 = arith.constant dense<0.000000e+00> : vector<16xf32>
    %8 = vector.multi_reduction <add>, %7, %cst_5 [1] : vector<16x256xf32> to vector<16xf32>
    %9 = vector.shape_cast %8 : vector<16xf32> to vector<16x1xf32>
    %c0_6 = arith.constant 0 : index
    %c0_7 = arith.constant 0 : index
    %c0_8 = arith.constant 0 : index
    %10 = vector.load %arg3[%c0_6, %c0_7, %c0_8] : memref<1x16x1xf32, #tpu.memory_space<vmem>>, vector<1x16x1xf32>
    %11 = vector.shape_cast %10 : vector<1x16x1xf32> to vector<16x1xf32>
    %12 = vector.shape_cast %9 : vector<16x1xf32> to vector<1x16x1xf32>
    tpu.vector_store %arg3[%c0_6, %c0_7, %c0_8], %12 {strides = array<i32>} : memref<1x16x1xf32, #tpu.memory_space<vmem>>, vector<1x16x1xf32>,
    return
  }
  func.func @transform_0(%arg0: i32) -> (i32, i32, i32) {
    %c0_i32 = arith.constant 0 : i32
    %c0_i32_0 = arith.constant 0 : i32
    %c0_i32_1 = arith.constant 0 : i32
    return %arg0, %c0_i32, %c0_i32_0 : i32, i32, i32
  }
  func.func @transform_1(%arg0: i32) -> (i32, i32, i32) {
    %c0_i32 = arith.constant 0 : i32
    %c0_i32_0 = arith.constant 0 : i32
    %c0_i32_1 = arith.constant 0 : i32
    return %arg0, %c0_i32, %c0_i32_0 : i32, i32, i32
  }
  func.func @transform_2(%arg0: i32) -> (i32, i32, i32) {
    %c0_i32 = arith.constant 0 : i32
    %c0_i32_0 = arith.constant 0 : i32
    %c0_i32_1 = arith.constant 0 : i32
    return %arg0, %c0_i32, %c0_i32_0 : i32, i32, i32
  }
}

module attributes {stable_mosaic.version = 11 : i64} {
  func.func @_apply1_kernel(%arg0: i32, %arg1: memref<1x16x256xf32, #tpu.memory_space<vmem>>, %arg2: memref<16x1xf32, #tpu.memory_space<vmem>>, %arg3: memref<16x1xf32, #tpu.memory_space<vmem>>, %arg4: memref<16x48xbf16, #tpu.memory_space<vmem>>, %arg5: memref<16x1xf32, #tpu.memory_space<vmem>>, %arg6: memref<1x16x256xf32, #tpu.memory_space<vmem>>, %arg7: memref<1x16x1xf32, #tpu.memory_space<vmem>>, %arg8: memref<1x16x1xf32, #tpu.memory_space<vmem>>) attributes {dimension_semantics = [#tpu.dimension_semantics<parallel>], iteration_bounds = array<i64: 4>, scalar_prefetch = 0 : i64, scratch_operands = 0 : i64, tpu.core_type = #tpu.core_type<tc>, window_params = [{transform_indices = @transform_0, window_bounds = array<i64: 1, 16, 256>}, {pipeline_mode = #tpu.pipeline_mode<synchronous>, transform_indices = @transform_1, window_bounds = array<i64: 16, 1>}, {pipeline_mode = #tpu.pipeline_mode<synchronous>, transform_indices = @transform_2, window_bounds = array<i64: 16, 1>}, {pipeline_mode = #tpu.pipeline_mode<synchronous>, transform_indices = @transform_3, window_bounds = array<i64: 16, 48>}, {pipeline_mode = #tpu.pipeline_mode<synchronous>, transform_indices = @transform_4, window_bounds = array<i64: 16, 1>}, {transform_indices = @transform_5, window_bounds = array<i64: 1, 16, 256>}, {transform_indices = @transform_6, window_bounds = array<i64: 1, 16, 1>}, {transform_indices = @transform_7, window_bounds = array<i64: 1, 16, 1>}]} {
    %c0 = arith.constant 0 : index
    %c0_0 = arith.constant 0 : index
    %c0_1 = arith.constant 0 : index
    %0 = vector.load %arg1[%c0, %c0_0, %c0_1] : memref<1x16x256xf32, #tpu.memory_space<vmem>>, vector<1x16x256xf32>
    %1 = vector.shape_cast %0 : vector<1x16x256xf32> to vector<16x256xf32>
    %c0_2 = arith.constant 0 : index
    %c0_3 = arith.constant 0 : index
    %2 = vector.load %arg2[%c0_2, %c0_3] : memref<16x1xf32, #tpu.memory_space<vmem>>, vector<16x1xf32>
    %c0_4 = arith.constant 0 : index
    %c0_5 = arith.constant 0 : index
    %3 = vector.load %arg3[%c0_4, %c0_5] : memref<16x1xf32, #tpu.memory_space<vmem>>, vector<16x1xf32>
    %c0_6 = arith.constant 0 : index
    %c0_7 = arith.constant 0 : index
    %4 = vector.load %arg4[%c0_6, %c0_7] : memref<16x48xbf16, #tpu.memory_space<vmem>>, vector<16x48xbf16>
    %c0_8 = arith.constant 0 : index
    %c0_9 = arith.constant 0 : index
    %5 = vector.load %arg5[%c0_8, %c0_9] : memref<16x1xf32, #tpu.memory_space<vmem>>, vector<16x1xf32>
    %6 = vector.broadcast %2 : vector<16x1xf32> to vector<16x256xf32>
    %7 = arith.mulf %1, %6 : vector<16x256xf32>
    %8 = vector.broadcast %3 : vector<16x1xf32> to vector<16x256xf32>
    %9 = arith.addf %7, %8 : vector<16x256xf32>
    %10 = arith.negf %9 : vector<16x256xf32>
    %11 = math.exp %10 : vector<16x256xf32>
    %cst = arith.constant 1.000000e+00 : f32
    %12 = vector.broadcast %cst : f32 to vector<16x256xf32>
    %13 = arith.addf %12, %11 : vector<16x256xf32>
    %14 = arith.divf %12, %13 : vector<16x256xf32>
    %15 = arith.mulf %9, %14 : vector<16x256xf32>
    %16 = tpu.iota {dimensions = array<i32: 1>} : vector<16x256xi32>
    %c0_i32 = arith.constant 0 : i32
    %17 = vector.broadcast %c0_i32 : i32 to vector<16x256xi32>
    %18 = arith.cmpi eq, %16, %17 : vector<16x256xi32>
    %c1_i32 = arith.constant 1 : i32
    %19 = tpu.dynamic_rotate %15 by %c1_i32 dim 1 : vector<16x256xf32>, i32 -> vector<16x256xf32>
    %cst_10 = arith.constant 0.000000e+00 : f32
    %20 = vector.broadcast %cst_10 : f32 to vector<16x256xf32>
    %21 = arith.select %18, %20, %19 : vector<16x256xi1>, vector<16x256xf32>
    %c255_i32 = arith.constant 255 : i32
    %22 = vector.broadcast %c255_i32 : i32 to vector<16x256xi32>
    %23 = arith.cmpi eq, %16, %22 : vector<16x256xi32>
    %c255_i32_11 = arith.constant 255 : i32
    %24 = tpu.dynamic_rotate %15 by %c255_i32_11 dim 1 : vector<16x256xf32>, i32 -> vector<16x256xf32>
    %cst_12 = arith.constant 0.000000e+00 : f32
    %25 = vector.broadcast %cst_12 : f32 to vector<16x256xf32>
    %26 = arith.select %23, %25, %24 : vector<16x256xi1>, vector<16x256xf32>
    %27 = tpu.concatenate %21, %15, %26 in 0 : vector<16x256xf32>, vector<16x256xf32>, vector<16x256xf32> -> vector<48x256xf32>
    %28 = arith.truncf %27 : vector<48x256xf32> to vector<48x256xbf16>
    %cst_13 = arith.constant dense<0.000000e+00> : vector<16x256xf32>
    %29 = tpu.matmul %4, %28, %cst_13 {dimension_numbers = #tpu.dot_dimension_numbers<[1], [0], [0], [1], [0, 0, 1, 1], [], []>} : vector<16x48xbf16>, vector<48x256xbf16>, vector<16x256xf32> -> vector<16x256xf32>
    %30 = vector.broadcast %5 : vector<16x1xf32> to vector<16x256xf32>
    %31 = arith.addf %29, %30 : vector<16x256xf32>
    %c0_14 = arith.constant 0 : index
    %c0_15 = arith.constant 0 : index
    %c0_16 = arith.constant 0 : index
    %32 = vector.load %arg6[%c0_14, %c0_15, %c0_16] : memref<1x16x256xf32, #tpu.memory_space<vmem>>, vector<1x16x256xf32>
    %33 = vector.shape_cast %32 : vector<1x16x256xf32> to vector<16x256xf32>
    %34 = vector.shape_cast %31 : vector<16x256xf32> to vector<1x16x256xf32>
    tpu.vector_store %arg6[%c0_14, %c0_15, %c0_16], %34 {strides = array<i32>} : memref<1x16x256xf32, #tpu.memory_space<vmem>>, vector<1x16x256xf32>,
    %cst_17 = arith.constant dense<0.000000e+00> : vector<16xf32>
    %35 = vector.multi_reduction <add>, %31, %cst_17 [1] : vector<16x256xf32> to vector<16xf32>
    %36 = vector.shape_cast %35 : vector<16xf32> to vector<16x1xf32>
    %c0_18 = arith.constant 0 : index
    %c0_19 = arith.constant 0 : index
    %c0_20 = arith.constant 0 : index
    %37 = vector.load %arg7[%c0_18, %c0_19, %c0_20] : memref<1x16x1xf32, #tpu.memory_space<vmem>>, vector<1x16x1xf32>
    %38 = vector.shape_cast %37 : vector<1x16x1xf32> to vector<16x1xf32>
    %39 = vector.shape_cast %36 : vector<16x1xf32> to vector<1x16x1xf32>
    tpu.vector_store %arg7[%c0_18, %c0_19, %c0_20], %39 {strides = array<i32>} : memref<1x16x1xf32, #tpu.memory_space<vmem>>, vector<1x16x1xf32>,
    %40 = arith.mulf %31, %31 : vector<16x256xf32>
    %cst_21 = arith.constant dense<0.000000e+00> : vector<16xf32>
    %41 = vector.multi_reduction <add>, %40, %cst_21 [1] : vector<16x256xf32> to vector<16xf32>
    %42 = vector.shape_cast %41 : vector<16xf32> to vector<16x1xf32>
    %c0_22 = arith.constant 0 : index
    %c0_23 = arith.constant 0 : index
    %c0_24 = arith.constant 0 : index
    %43 = vector.load %arg8[%c0_22, %c0_23, %c0_24] : memref<1x16x1xf32, #tpu.memory_space<vmem>>, vector<1x16x1xf32>
    %44 = vector.shape_cast %43 : vector<1x16x1xf32> to vector<16x1xf32>
    %45 = vector.shape_cast %42 : vector<16x1xf32> to vector<1x16x1xf32>
    tpu.vector_store %arg8[%c0_22, %c0_23, %c0_24], %45 {strides = array<i32>} : memref<1x16x1xf32, #tpu.memory_space<vmem>>, vector<1x16x1xf32>,
    return
  }
  func.func @transform_0(%arg0: i32) -> (i32, i32, i32) {
    %c0_i32 = arith.constant 0 : i32
    %c0_i32_0 = arith.constant 0 : i32
    %c0_i32_1 = arith.constant 0 : i32
    return %arg0, %c0_i32, %c0_i32_0 : i32, i32, i32
  }
  func.func @transform_1(%arg0: i32) -> (i32, i32) {
    %c0_i32 = arith.constant 0 : i32
    %c0_i32_0 = arith.constant 0 : i32
    %c0_i32_1 = arith.constant 0 : i32
    return %c0_i32, %c0_i32_0 : i32, i32
  }
  func.func @transform_2(%arg0: i32) -> (i32, i32) {
    %c0_i32 = arith.constant 0 : i32
    %c0_i32_0 = arith.constant 0 : i32
    %c0_i32_1 = arith.constant 0 : i32
    return %c0_i32, %c0_i32_0 : i32, i32
  }
  func.func @transform_3(%arg0: i32) -> (i32, i32) {
    %c0_i32 = arith.constant 0 : i32
    %c0_i32_0 = arith.constant 0 : i32
    %c0_i32_1 = arith.constant 0 : i32
    return %c0_i32, %c0_i32_0 : i32, i32
  }
  func.func @transform_4(%arg0: i32) -> (i32, i32) {
    %c0_i32 = arith.constant 0 : i32
    %c0_i32_0 = arith.constant 0 : i32
    %c0_i32_1 = arith.constant 0 : i32
    return %c0_i32, %c0_i32_0 : i32, i32
  }
  func.func @transform_5(%arg0: i32) -> (i32, i32, i32) {
    %c0_i32 = arith.constant 0 : i32
    %c0_i32_0 = arith.constant 0 : i32
    %c0_i32_1 = arith.constant 0 : i32
    return %arg0, %c0_i32, %c0_i32_0 : i32, i32, i32
  }
  func.func @transform_6(%arg0: i32) -> (i32, i32, i32) {
    %c0_i32 = arith.constant 0 : i32
    %c0_i32_0 = arith.constant 0 : i32
    %c0_i32_1 = arith.constant 0 : i32
    return %arg0, %c0_i32, %c0_i32_0 : i32, i32, i32
  }
  func.func @transform_7(%arg0: i32) -> (i32, i32, i32) {
    %c0_i32 = arith.constant 0 : i32
    %c0_i32_0 = arith.constant 0 : i32
    %c0_i32_1 = arith.constant 0 : i32
    return %arg0, %c0_i32, %c0_i32_0 : i32, i32, i32
  }
}

module attributes {stable_mosaic.version = 11 : i64} {
  func.func @_apply2_kernel(%arg0: i32, %arg1: memref<1x16x256xf32, #tpu.memory_space<vmem>>, %arg2: memref<1x16x256xf32, #tpu.memory_space<vmem>>, %arg3: memref<16x1xf32, #tpu.memory_space<vmem>>, %arg4: memref<16x1xf32, #tpu.memory_space<vmem>>, %arg5: memref<16x48xbf16, #tpu.memory_space<vmem>>, %arg6: memref<16x1xf32, #tpu.memory_space<vmem>>, %arg7: memref<1x16x256xf32, #tpu.memory_space<vmem>>) attributes {dimension_semantics = [#tpu.dimension_semantics<parallel>], iteration_bounds = array<i64: 4>, scalar_prefetch = 0 : i64, scratch_operands = 0 : i64, tpu.core_type = #tpu.core_type<tc>, window_params = [{transform_indices = @transform_0, window_bounds = array<i64: 1, 16, 256>}, {transform_indices = @transform_1, window_bounds = array<i64: 1, 16, 256>}, {pipeline_mode = #tpu.pipeline_mode<synchronous>, transform_indices = @transform_2, window_bounds = array<i64: 16, 1>}, {pipeline_mode = #tpu.pipeline_mode<synchronous>, transform_indices = @transform_3, window_bounds = array<i64: 16, 1>}, {pipeline_mode = #tpu.pipeline_mode<synchronous>, transform_indices = @transform_4, window_bounds = array<i64: 16, 48>}, {pipeline_mode = #tpu.pipeline_mode<synchronous>, transform_indices = @transform_5, window_bounds = array<i64: 16, 1>}, {transform_indices = @transform_6, window_bounds = array<i64: 1, 16, 256>}]} {
    %c0 = arith.constant 0 : index
    %c0_0 = arith.constant 0 : index
    %c0_1 = arith.constant 0 : index
    %0 = vector.load %arg2[%c0, %c0_0, %c0_1] : memref<1x16x256xf32, #tpu.memory_space<vmem>>, vector<1x16x256xf32>
    %1 = vector.shape_cast %0 : vector<1x16x256xf32> to vector<16x256xf32>
    %c0_2 = arith.constant 0 : index
    %c0_3 = arith.constant 0 : index
    %2 = vector.load %arg3[%c0_2, %c0_3] : memref<16x1xf32, #tpu.memory_space<vmem>>, vector<16x1xf32>
    %c0_4 = arith.constant 0 : index
    %c0_5 = arith.constant 0 : index
    %3 = vector.load %arg4[%c0_4, %c0_5] : memref<16x1xf32, #tpu.memory_space<vmem>>, vector<16x1xf32>
    %c0_6 = arith.constant 0 : index
    %c0_7 = arith.constant 0 : index
    %4 = vector.load %arg5[%c0_6, %c0_7] : memref<16x48xbf16, #tpu.memory_space<vmem>>, vector<16x48xbf16>
    %c0_8 = arith.constant 0 : index
    %c0_9 = arith.constant 0 : index
    %5 = vector.load %arg6[%c0_8, %c0_9] : memref<16x1xf32, #tpu.memory_space<vmem>>, vector<16x1xf32>
    %6 = vector.broadcast %2 : vector<16x1xf32> to vector<16x256xf32>
    %7 = arith.mulf %1, %6 : vector<16x256xf32>
    %8 = vector.broadcast %3 : vector<16x1xf32> to vector<16x256xf32>
    %9 = arith.addf %7, %8 : vector<16x256xf32>
    %10 = arith.negf %9 : vector<16x256xf32>
    %11 = math.exp %10 : vector<16x256xf32>
    %cst = arith.constant 1.000000e+00 : f32
    %12 = vector.broadcast %cst : f32 to vector<16x256xf32>
    %13 = arith.addf %12, %11 : vector<16x256xf32>
    %14 = arith.divf %12, %13 : vector<16x256xf32>
    %15 = arith.mulf %9, %14 : vector<16x256xf32>
    %16 = tpu.iota {dimensions = array<i32: 1>} : vector<16x256xi32>
    %c0_i32 = arith.constant 0 : i32
    %17 = vector.broadcast %c0_i32 : i32 to vector<16x256xi32>
    %18 = arith.cmpi eq, %16, %17 : vector<16x256xi32>
    %c1_i32 = arith.constant 1 : i32
    %19 = tpu.dynamic_rotate %15 by %c1_i32 dim 1 : vector<16x256xf32>, i32 -> vector<16x256xf32>
    %cst_10 = arith.constant 0.000000e+00 : f32
    %20 = vector.broadcast %cst_10 : f32 to vector<16x256xf32>
    %21 = arith.select %18, %20, %19 : vector<16x256xi1>, vector<16x256xf32>
    %c255_i32 = arith.constant 255 : i32
    %22 = vector.broadcast %c255_i32 : i32 to vector<16x256xi32>
    %23 = arith.cmpi eq, %16, %22 : vector<16x256xi32>
    %c255_i32_11 = arith.constant 255 : i32
    %24 = tpu.dynamic_rotate %15 by %c255_i32_11 dim 1 : vector<16x256xf32>, i32 -> vector<16x256xf32>
    %cst_12 = arith.constant 0.000000e+00 : f32
    %25 = vector.broadcast %cst_12 : f32 to vector<16x256xf32>
    %26 = arith.select %23, %25, %24 : vector<16x256xi1>, vector<16x256xf32>
    %27 = tpu.concatenate %21, %15, %26 in 0 : vector<16x256xf32>, vector<16x256xf32>, vector<16x256xf32> -> vector<48x256xf32>
    %28 = arith.truncf %27 : vector<48x256xf32> to vector<48x256xbf16>
    %cst_13 = arith.constant dense<0.000000e+00> : vector<16x256xf32>
    %29 = tpu.matmul %4, %28, %cst_13 {dimension_numbers = #tpu.dot_dimension_numbers<[1], [0], [0], [1], [0, 0, 1, 1], [], []>} : vector<16x48xbf16>, vector<48x256xbf16>, vector<16x256xf32> -> vector<16x256xf32>
    %30 = vector.broadcast %5 : vector<16x1xf32> to vector<16x256xf32>
    %31 = arith.addf %29, %30 : vector<16x256xf32>
    %c0_14 = arith.constant 0 : index
    %c0_15 = arith.constant 0 : index
    %c0_16 = arith.constant 0 : index
    %32 = vector.load %arg1[%c0_14, %c0_15, %c0_16] : memref<1x16x256xf32, #tpu.memory_space<vmem>>, vector<1x16x256xf32>
    %33 = vector.shape_cast %32 : vector<1x16x256xf32> to vector<16x256xf32>
    %cst_17 = arith.constant 1.000000e-01 : f32
    %34 = vector.broadcast %cst_17 : f32 to vector<16x256xf32>
    %35 = arith.mulf %34, %31 : vector<16x256xf32>
    %36 = arith.addf %33, %35 : vector<16x256xf32>
    %c0_18 = arith.constant 0 : index
    %c0_19 = arith.constant 0 : index
    %c0_20 = arith.constant 0 : index
    %37 = vector.load %arg7[%c0_18, %c0_19, %c0_20] : memref<1x16x256xf32, #tpu.memory_space<vmem>>, vector<1x16x256xf32>
    %38 = vector.shape_cast %37 : vector<1x16x256xf32> to vector<16x256xf32>
    %39 = vector.shape_cast %36 : vector<16x256xf32> to vector<1x16x256xf32>
    tpu.vector_store %arg7[%c0_18, %c0_19, %c0_20], %39 {strides = array<i32>} : memref<1x16x256xf32, #tpu.memory_space<vmem>>, vector<1x16x256xf32>,
    return
  }
  func.func @transform_0(%arg0: i32) -> (i32, i32, i32) {
    %c0_i32 = arith.constant 0 : i32
    %c0_i32_0 = arith.constant 0 : i32
    %c0_i32_1 = arith.constant 0 : i32
    return %arg0, %c0_i32, %c0_i32_0 : i32, i32, i32
  }
  func.func @transform_1(%arg0: i32) -> (i32, i32, i32) {
    %c0_i32 = arith.constant 0 : i32
    %c0_i32_0 = arith.constant 0 : i32
    %c0_i32_1 = arith.constant 0 : i32
    return %arg0, %c0_i32, %c0_i32_0 : i32, i32, i32
  }
  func.func @transform_2(%arg0: i32) -> (i32, i32) {
    %c0_i32 = arith.constant 0 : i32
    %c0_i32_0 = arith.constant 0 : i32
    %c0_i32_1 = arith.constant 0 : i32
    return %c0_i32, %c0_i32_0 : i32, i32
  }
  func.func @transform_3(%arg0: i32) -> (i32, i32) {
    %c0_i32 = arith.constant 0 : i32
    %c0_i32_0 = arith.constant 0 : i32
    %c0_i32_1 = arith.constant 0 : i32
    return %c0_i32, %c0_i32_0 : i32, i32
  }
  func.func @transform_4(%arg0: i32) -> (i32, i32) {
    %c0_i32 = arith.constant 0 : i32
    %c0_i32_0 = arith.constant 0 : i32
    %c0_i32_1 = arith.constant 0 : i32
    return %c0_i32, %c0_i32_0 : i32, i32
  }
  func.func @transform_5(%arg0: i32) -> (i32, i32) {
    %c0_i32 = arith.constant 0 : i32
    %c0_i32_0 = arith.constant 0 : i32
    %c0_i32_1 = arith.constant 0 : i32
    return %c0_i32, %c0_i32_0 : i32, i32
  }
  func.func @transform_6(%arg0: i32) -> (i32, i32, i32) {
    %c0_i32 = arith.constant 0 : i32
    %c0_i32_0 = arith.constant 0 : i32
    %c0_i32_1 = arith.constant 0 : i32
    return %arg0, %c0_i32, %c0_i32_0 : i32, i32, i32
  }
}

</mosaic_0001>

<bundles_post_ra>
// kernel: encoder_residual_block.4
= control target key start
LH: loop header
LB: loop body
LE: loop exit
PB: predicated region body
PF: predicated region fallthrough
CT: control target
= control target key end

     0   :  { %s808_s24 = smov 0   ;;  %s889_s0 = inlined_call_operand.vmem [shape: f32[4,16,256], index: 0, kind: input, shape index: {}]   ;;  %s890_s1 = inlined_call_operand.vmem [shape: f32[16,1], index: 1, kind: input, shape index: {}]   ;;  %s891_s2 = inlined_call_operand.vmem [shape: f32[16,1], index: 2, kind: input, shape index: {}]   ;;  %s892_s3 = inlined_call_operand.vmem [shape: bf16[16,48], index: 3, kind: input, shape index: {}]   ;;  %s893_s4 = inlined_call_operand.vmem [shape: f32[16,1], index: 4, kind: input, shape index: {}]   ;;  %s894_s5 = inlined_call_operand.vmem [shape: f32[4,16,256], index: 5, kind: output, shape index: {0}]   ;;  %s895_s6 = inlined_call_operand.vmem [shape: f32[4,16,1], index: 6, kind: output, shape index: {1}]   ;;  %s896_s7 = inlined_call_operand.vmem [shape: f32[4,16,1], index: 7, kind: output, shape index: {2}]  }
   0x1 LB: > { %s665_s25 = sadd.s32 4294967295, %s763_s24   ;;  %p669_p0 = scmp.ge.s32.totalorder %s763_s24, 1  ;;  %s763_s24 = sphi %s808_s24, %s18_s24  }
   0x2   : > { %p242_p1 = scmp.lt.s32.totalorder %s763_s24, 5 }
   0x4   : > { %p243_p2 = pnand %p669_p0, %p242_p1 }
   0x5   : > { %p284_p3 = scmp.lt.s32.totalorder (!%p243_p2), %s665_s25, 3  ;;  %s766_s15 = smov (!%p243_p2), 1  }
   0x6   : > { %246 = sbr.rel (%p243_p2) target bundleno = 561 (0x231), region = 40  ;;  %s767_s16 = smov (!%p243_p2), 127  }
   0xb   : > { %v311_v0 = vld [vmem:[%s891_s2] sm:$0xff]  ;;  %v765_v2 = vmov 0   ;;  %v312_v3 = vld [vmem:[%s891_s2 + $0x8] sm:$0xff]  ;;  %s902_s25 = smov (!%p284_p3, %s665_s25), 3 }
   0xc   : > { %v309_v1 = vld [vmem:[%s890_s1] sm:$0xff]  ;;  %719 = vset.pattern.permute.xlu1 %v765_v2  ;;  %718 = vset.pattern.permute.xlu0 %v765_v2  ;;  %v310_v4 = vld [vmem:[%s890_s1 + $0x8] sm:$0xff]  ;;  %s700_s11 = sshll.u32 %s902_s25, 5  ;;  %s702_s28 = sshll.u32 %s902_s25, 4 }
   0xd   : > { %333 = vperm.xlu1 %719, %v311_v0   ;;  %319 = vperm.xlu0 %718, %v309_v1   ;;  %s288_s14 = scalar_lea.vmem %s889_s0, %s700_s11  ;;  %s293_s27 = scalar_lea.vmem %s894_s5, %s700_s11 }
   0xe   : > { %740 = vset.pattern.permute.xlu2 %v765_v2  ;;  %v305_v5 = vld [vmem:[%s288_s14] sm:$0xff]  ;;  %v306_v6 = vld [vmem:[%s288_s14 + $0x8] sm:$0xff]  ;;  %v307_v15 = vld [vmem:[%s288_s14 + $0x10] sm:$0xff]  ;;  %s298_s8 = scalar_lea.vmem %s895_s6, %s702_s28  ;;  %s303_s11 = scalar_lea.vmem %s896_s7, %s702_s28 }
   0xf   : > { %v308_v16 = vld [vmem:[%s288_s14 + $0x18] sm:$0xff] }
  0x15   : > { %338 = vperm.xlu1 %719, %v312_v3   ;;  %324 = vperm.xlu0 %718, %v310_v4  }
  0x7f   : > { %v334_v7 = vpop.permute.xlu1 %333  ;;  %v320_v8 = vpop.permute.xlu0 %319 }
  0x80   : > { %v327_v9 = vmul.f32 %v320_v8, %v305_v5  ;;  %v328_v10 = vmul.f32 %v320_v8, %v306_v6 }
  0x82   : > { %v836_v11 = vadd.f32 %v334_v7, %v327_v9  ;;  %v838_v12 = vadd.f32 %v334_v7, %v328_v10 }
  0x84   : > { %v678_v13 = vmul.f32 -1.442695, %v836_v11  ;;  %v679_v14 = vmul.f32 -1.442695, %v838_v12 }
  0x86   : > { %741 = vpow2.f32 %v678_v13 }
  0x87   : > { %743 = vpow2.f32 %v679_v14  ;;  %v325_v17 = vpop.permute.xlu0 %324  ;;  %v339_v20 = vpop.permute.xlu1 %338 }
  0x88   : > { %v329_v18 = vmul.f32 %v325_v17, %v307_v15  ;;  %v330_v19 = vmul.f32 %v325_v17, %v308_v16 }
  0x8a   : > { %v842_v21 = vadd.f32 %v339_v20, %v329_v18  ;;  %v844_v22 = vadd.f32 %v339_v20, %v330_v19 }
  0x8c   : > { %v742_v23 = vpop.eup %741  ;;  %v680_v24 = vmul.f32 -1.442695, %v842_v21  ;;  %v681_v27 = vmul.f32 -1.442695, %v844_v22 }
  0x8d   : > { %v744_v25 = vpop.eup %743  ;;  %v357_v26 = vadd.f32 1.0, %v742_v23 }
  0x8e   : > { %v358_v28 = vadd.f32 1.0, %v744_v25  ;;  %745 = vpow2.f32 %v680_v24 }
  0x8f   : > { %747 = vrcp.f32 %v357_v26  ;;  %vm366_vm1 = vweird.f32 %v357_v26  ;;  %v370_v44 = vand.u32 2147483647, %v357_v26  ;;  %v372_v45 = vand.u32 2147483648, %v357_v26 }
  0x90   : > { %749 = vrcp.f32 %v358_v28  ;;  %vm381_vm2 = vweird.f32 %v358_v28  ;;  %v385_v47 = vand.u32 2147483647, %v358_v28  ;;  %v387_v52 = vand.u32 2147483648, %v358_v28 }
  0x91   : > { %751 = vpow2.f32 %v681_v27  ;;  %vm371_vm6 = vcmp.eq.f32.partialorder %v370_v44, 8.507059e+37  ;;  %v373_v57 = vor.u32 1.1754944e-38, %v372_v45 }
  0x92   : > { %v388_v3 = vor.u32 1.1754944e-38, %v387_v52  ;;  %vm386_vm12 = vcmp.eq.f32.partialorder %v385_v47, 8.507059e+37 }
  0x94   : > { %v746_v29 = vpop.eup %745 }
  0x95   : > { %v748_v30 = vpop.eup %747  ;;  %v359_v31 = vadd.f32 1.0, %v746_v29 }
  0x96   : > { %v750_v32 = vpop.eup %749  ;;  %v362_v33 = vmul.f32 %v748_v30, %v357_v26  ;;  %vm367_vm0 = vweird.f32 %v748_v30 }
  0x97   : > { %v752_v34 = vpop.eup %751  ;;  %v377_v35 = vmul.f32 %v750_v32, %v358_v28  ;;  %753 = vrcp.f32 %v359_v31  ;;  %v402_v49 = vand.u32 2147483648, %v359_v31  ;;  %vm848_vm3 = vmor %vm366_vm1, %vm367_vm0  ;;  %vm382_vm4 = vweird.f32 %v750_v32 }
  0x98   : > { %v363_v36 = vsub.f32 1.0, %v362_v33  ;;  %v360_v37 = vadd.f32 1.0, %v752_v34  ;;  %v400_v56 = vand.u32 2147483647, %v359_v31  ;;  %vm396_vm7 = vweird.f32 %v359_v31  ;;  %vm855_vm8 = vmor %vm381_vm2, %vm382_vm4 }
  0x99   : > { %v378_v38 = vsub.f32 1.0, %v377_v35  ;;  %v403_v61 = vor.u32 1.1754944e-38, %v402_v49 }
  0x9a   : > { %v364_v39 = vmul.f32 %v748_v30, %v363_v36  ;;  %755 = vrcp.f32 %v360_v37  ;;  %v415_v62 = vand.u32 2147483647, %v360_v37  ;;  %v417_v63 = vand.u32 2147483648, %v360_v37 }
  0x9b   : > { %v379_v41 = vmul.f32 %v750_v32, %v378_v38  ;;  %vm401_vm11 = vcmp.eq.f32.partialorder %v400_v56, 8.507059e+37  ;;  %vm411_vm13 = vweird.f32 %v360_v37 }
  0x9c   : > { %v365_v42 = vadd.f32 %v748_v30, %v364_v39  ;;  %v418_v9 = vor.u32 1.1754944e-38, %v417_v63  ;;  %vm416_vm15 = vcmp.eq.f32.partialorder %v415_v62, 8.507059e+37 }
  0x9d   : > { %v754_v40 = vpop.eup %753  ;;  %v380_v51 = vadd.f32 %v750_v32, %v379_v41 }
  0x9e   : > { %v392_v43 = vmul.f32 %v754_v40, %v359_v31  ;;  %v369_v54 = vsel %vm848_vm3, %v748_v30, %v365_v42  ;;  %vm397_vm5 = vweird.f32 %v754_v40 }
  0x9f   : > { %v374_v0 = vsel %vm371_vm6, %v373_v57, %v369_v54  ;;  %v384_v1 = vsel %vm855_vm8, %v750_v32, %v380_v51  ;;  %vm398_vm9 = vmor %vm396_vm7, %vm397_vm5  ;;  %vm487_vm6 = vcmask 392192   ;;  %vm529_vm7 = vcmask 7168  }
  0xa0   : > { %v756_v46 = vpop.eup %755  ;;  %v393_v48 = vsub.f32 1.0, %v392_v43  ;;  %v389_v7 = vsel %vm386_vm12, %v388_v3, %v384_v1  ;;  %v421_v8 = vmul.f32 %v374_v0, %v836_v11  ;;  %v316_v11 = vld [vmem:[%s893_s4 + $0x8] sm:$0xff] }
  0xa1   : > { %v407_v53 = vmul.f32 %v756_v46, %v360_v37  ;;  %vm412_vm10 = vweird.f32 %v756_v46  ;;  %v422_v17 = vmul.f32 %v389_v7, %v838_v12  ;;  %v315_v12 = vld [vmem:[%s893_s4] sm:$0xff] }
  0xa2   : > { %v394_v55 = vmul.f32 %v754_v40, %v393_v48  ;;  %vm413_vm14 = vmor %vm411_vm13, %vm412_vm10  ;;  %v704_v48 = vld [vmem:[%s892_s3] sm:$0xff] }
  0xa3   : > { %v408_v58 = vsub.f32 1.0, %v407_v53 }
  0xa4   : > { %v395_v60 = vadd.f32 %v754_v40, %v394_v55 }
  0xa5   : > { %v409_v2 = vmul.f32 %v756_v46, %v408_v58 }
  0xa6   : > { %v399_v4 = vsel %vm398_vm9, %v754_v40, %v395_v60 }
  0xa7   : > { %v404_v5 = vsel %vm401_vm11, %v403_v61, %v399_v4  ;;  %v410_v6 = vadd.f32 %v756_v46, %v409_v2 }
  0xa8   : > { %v423_v10 = vmul.f32 %v404_v5, %v842_v21  ;;  %v425_v21 = vlaneseq }
  0xa9   : > { %v414_v13 = vsel %vm413_vm14, %v756_v46, %v410_v6 }
  0xaa   : > { %v419_v14 = vsel %vm416_vm15, %v418_v9, %v414_v13  ;;  %v730_v15 = vpack.i.bf16 %v423_v10, %v421_v8  ;;  %v468_v16 = vpack.c.bf16 %v423_v10, %v421_v8  ;;  %v426_v24 = vand.u32 127, %v425_v21 }
  0xab   : > { %v424_v18 = vmul.f32 %v419_v14, %v844_v22 }
  0xac   : > { %731 = vrot.lane.b32.xlu0 %v730_v15, %s766_s15  ;;  %721 = vrot.lane.b32.xlu2 %v730_v15, %s767_s16  ;;  %v427_v25 = vadd.s32 128, %v426_v24  ;;  %vm457_vm0 = vcmp.lt.s32.totalorder %v426_v24, 127  ;;  %vm438_vm3 = vcmp.lt.s32.totalorder %v426_v24, 1  ;;  %vm705_vm4 = vcmp.ne.s32.totalorder %v426_v24, 0 }
  0xad   : > { %v735_v19 = vpack.i.bf16 %v424_v18, %v422_v17  ;;  %v469_v20 = vpack.c.bf16 %v424_v18, %v422_v17  ;;  %vm688_vm5 = vmpackc.low %vm705_vm4, %vm705_vm4 }
  0xae   : > { %vm706_vm1 = vcmp.ne.s32.totalorder %v427_v25, 255 }
  0xaf   : > { %736 = vrot.lane.b32.xlu1 %v735_v19, %s766_s15  ;;  %vm694_vm2 = vmpackc.low %vm706_vm1, %vm706_vm1 }
  0xb4   : > { %479 = vperm.xlu0 %718, %v316_v11   ;;  %726 = vrot.lane.b32.xlu2 %v735_v19, %s767_s16 }
  0xbc   : > { %474 = vperm.xlu2 %740, %v315_v12  }
 0x106   : > { %v722_v23 = vpop.permute.xlu2 %721 }
 0x107   : > { %v724_v26 = vunpack.i.h.bf16 %v722_v23  ;;  %v723_v27 = vunpack.i.l.bf16 %v722_v23 }
 0x10e   : > { %v727_v22 = vpop.permute.xlu2 %726 }
 0x10f   : > { %v729_v28 = vunpack.i.h.bf16 %v727_v22  ;;  %v728_v29 = vunpack.i.l.bf16 %v727_v22 }
 0x111   : > { %v458_v30 = vsel %vm457_vm0, %v723_v27, %v728_v29  ;;  %v459_v31 = vsel %vm457_vm0, %v724_v26, %v729_v28  ;;  %v460_v32 = vsel %vm457_vm0, %v728_v29, %v723_v27  ;;  %v461_v33 = vsel %vm457_vm0, %v729_v28, %v724_v26 }
 0x112   : > { %v470_v34 = vpack.c.bf16 %v459_v31, %v458_v30  ;;  %v695_v35 = vpack.c.bf16 %v461_v33, %v460_v32 }
 0x114   : > { %496 = vmatpush.bf16.msra.mxu0 %v470_v34  ;;  %696 = vmatpush.bf16.msk.msra.mxu1 %vm694_vm2, %v695_v35 }
 0x116   : > { %v475_v49 = vpop.permute.xlu2 %474 }
 0x118   : > { %497 = vmatpush.bf16.msra.mxu0 %v468_v16  ;;  %511 = vmatpush.bf16.msra.mxu1 %v469_v20 }
 0x11e   : > { %v732_v36 = vpop.permute.xlu0 %731 }
 0x11f   : > { %v734_v37 = vunpack.i.h.bf16 %v732_v36  ;;  %v733_v38 = vunpack.i.l.bf16 %v732_v36 }
 0x121   : > { %v737_v39 = vpop.permute.xlu1 %736 }
 0x122   : > { %v739_v40 = vunpack.i.h.bf16 %v737_v39  ;;  %v738_v41 = vunpack.i.l.bf16 %v737_v39 }
 0x124   : > { %v441_v42 = vsel %vm438_vm3, %v738_v41, %v733_v38  ;;  %v442_v43 = vsel %vm438_vm3, %v739_v40, %v734_v37  ;;  %v439_v44 = vsel %vm438_vm3, %v733_v38, %v738_v41  ;;  %v440_v45 = vsel %vm438_vm3, %v734_v37, %v739_v40 }
 0x125   : > { %v689_v46 = vpack.c.bf16 %v442_v43, %v441_v42  ;;  %v467_v47 = vpack.c.bf16 %v440_v45, %v439_v44 }
 0x126   : > { %v480_v58 = vpop.permute.xlu0 %479 }
 0x127   : > { %690 = vmatpush.bf16.msk.msra.mxu0 %vm688_vm5, %v689_v46  ;;  %512 = vmatpush.bf16.msra.mxu1 %v467_v47 }
 0x12a   : > { %691 = vmatmul.msk.bf16.vlgmr.msra.gmra.mxu0 %vm487_vm6, %v704_v48  ;;  %697 = vmatmul.msk.bf16.vlgmr.msra.gmra.mxu1 %vm487_vm6, %v704_v48 }
 0x1a7   : > { %v500_v50 = vpop.f32.mrf.mxu0  ;;  %v514_v51 = vpop.f32.mrf.mxu1 }
 0x1a8   : > { %v501_v52 = vadd.f32 %v500_v50, %v475_v49  ;;  %v515_v53 = vadd.f32 %v514_v51, %v475_v49 }
 0x1aa   : > { %519 = vst [vmem:[%s293_s27] sm:$0xff] %v501_v52  ;;  %v523_v54 = vadd.f32 %v515_v53, %v501_v52  ;;  %v532_v55 = vmul.f32 %v501_v52, %v501_v52  ;;  %v533_v56 = vmul.f32 %v515_v53, %v515_v53 }
 0x1ab   : > { %520 = vst [vmem:[%s293_s27 + $0x8] sm:$0xff] %v515_v53 }
 0x1ac   : > { %524 = vadd.xlane.f32.xlu1 %v523_v54  ;;  %v536_v57 = vadd.f32 %v533_v56, %v532_v55 }
 0x1ae   : > { %537 = vadd.xlane.f32.xlu0 %v536_v57 }
 0x1af   : > { %v502_v59 = vpop.f32.mrf.mxu0  ;;  %v516_v60 = vpop.f32.mrf.mxu1 }
 0x1b0   : > { %v503_v61 = vadd.f32 %v502_v59, %v480_v58  ;;  %v517_v62 = vadd.f32 %v516_v60, %v480_v58 }
 0x1b2   : > { %521 = vst [vmem:[%s293_s27 + $0x10] sm:$0xff] %v503_v61  ;;  %v526_v63 = vadd.f32 %v517_v62, %v503_v61  ;;  %v534_v0 = vmul.f32 %v503_v61, %v503_v61  ;;  %v535_v1 = vmul.f32 %v517_v62, %v517_v62 }
 0x1b3   : > { %522 = vst [vmem:[%s293_s27 + $0x18] sm:$0xff] %v517_v62 }
 0x1b4   : > { %527 = vadd.xlane.f32.xlu2 %v526_v63  ;;  %v539_v2 = vadd.f32 %v535_v1, %v534_v0 }
 0x1bc   : > { %540 = vadd.xlane.f32.xlu2 %v539_v2 }
 0x21f   : > { %v525_v3 = vpop.xlane.xlu1 %524 }
 0x220   : > { %530 = vst.msk [vmem:[%s298_s8] sm:$0xff] %vm529_vm7, %v525_v3 }
 0x221   : > { %v538_v4 = vpop.xlane.xlu0 %537 }
 0x222   : > { %542 = vst.msk [vmem:[%s303_s11] sm:$0xff] %vm529_vm7, %v538_v4 }
 0x227   : > { %v528_v5 = vpop.xlane.xlu2 %527 }
 0x228   : > { %531 = vst.msk [vmem:[%s298_s8 + $0x8] sm:$0xff] %vm529_vm7, %v528_v5 }
 0x22f   : > { %v541_v6 = vpop.xlane.xlu2 %540 }
 0x230   : > { %543 = vst.msk [vmem:[%s303_s11 + $0x8] sm:$0xff] %vm529_vm7, %v541_v6 }
 0x231 PF: > { %s18_s24 = sadd.s32 1, %s763_s24  }
 0x232   : > { %p15_p4 = scmp.ge.s32.totalorder %s18_s24, 6  }
 0x234   :  { %17 = sbr.rel (!%p15_p4) target bundleno = 1 (0x1), region = 94 }

// kernel: encoder_residual_block.3
= control target key start
LH: loop header
LB: loop body
LE: loop exit
PB: predicated region body
PF: predicated region fallthrough
CT: control target
= control target key end

     0   :  { %8 = vsyncpa [#allocation3], 0  ;;  %s540_s0 = inlined_call_operand.hbm [shape: f32[4,16,256], index: 0, kind: input, shape index: {}]   ;;  %s541_s1 = inlined_call_operand.vmem [shape: f32[4,16,1], index: 1, kind: output, shape index: {0}]   ;;  %s542_s2 = inlined_call_operand.vmem [shape: f32[4,16,1], index: 2, kind: output, shape index: {1}]  }
   0x1   :  { %10 = vsyncpa [#allocation3 + $0x1], 0  ;;  %s445_s9 = smov 0   ;;  %s447_s10 = smov 0  }
   0x2   :  { %s449_s11 = smov 0   ;;  %s451_s12 = smov 0  }
   0x3 LB: > { %s464_s13 = sadd.s32 4294967295, %s426_s12   ;;  %s467_s14 = sadd.s32 1, %s426_s12   ;;  %s426_s12 = sphi %s451_s12, %s549_s12   ;;  %s422_s11 = sphi %s449_s11, %s548_s11   ;;  %s418_s10 = sphi %s447_s10, %s547_s10   ;;  %s414_s9 = sphi %s445_s9, %s546_s9  }
   0x4   : > { %s20_s15 = ssub.s32 %s426_s12, %s467_s14  ;;  %s23_s16 = sadd.s32 1, %s422_s11 }
   0x5   : > { %p21_p0 = scmp.eq.s32.totalorder %s20_s15, 0  ;;  %p30_p1 = scmp.ne.s32.totalorder %s422_s11, %s418_s10 }
   0x6   : > { %p31_p2 = scmp.eq.s32.totalorder %s426_s12, 0  ;;  %p36_p3 = scmp.ne.s32.totalorder %s418_s10, %s414_s9 }
   0x7   : > { %s477_s17 = scalar_select %p21_p0, %s422_s11, %s23_s16  }
   0x8   : > { %p479_p4 = por %p31_p2, %p30_p1  ;;  %p37_p5 = scmp.eq.s32.totalorder %s464_s13, 0 }
   0x9   : > { %p327_p6 = scmp.lt.s32.totalorder %s426_s12, 4  ;;  %s112_s20 = sand.u32 1, %s422_s11  }
   0xa   : > { %p485_p7 = por %p37_p5, %p36_p3  ;;  %s307_s21 = sshll.u32 %s112_s20, 5 }
   0xb   : > { %s318_s22 = sshll.u32 %s426_s12, 5  ;;  %s116_s26 = scalar_lea.vmem [#allocation2], %s307_s21 }
   0xc   : > { %s121_s25 = scalar_lea.hbm %s540_s0, %s318_s22  ;;  %s124_s27 = sshll.u32 %s116_s26, 4  ;;  %s125_s27 = int_to_ptr.vmem [resolvable:$true] %s124_s27 }
   0xd   : > { %s122_s28 = sshll.u32 %s121_s25, 4  ;;  %p496_p8 = pnand %p327_p6, %p479_p4  ;;  %s123_s28 = int_to_ptr.hbm [resolvable:$true] %s122_s28 }
   0xe   : > { %p310_p9 = scmp.ge.s32.totalorder %s426_s12, 1  ;;  %s113_s30 = scalar_lea.sflag [#allocation3], %s112_s20 }
   0xf   : > { %s362_s3 = sshra.s32 %s123_s28, 4  ;;  %p366_p11 = pneg %p496_p8  ;;  %s363_s3 = int_to_ptr.hbm [resolvable:$true] %s362_s3 }
  0x10   : > { %s364_s4 = scalar_lea.hbm %s363_s3, 32  ;;  %s369_s7 = scalar_lea.hbm %s540_s0, 128 }
  0x11   : > { %p365_p10 = scmp.ne.s32.totalorder %s363_s3, %s364_s4  ;;  %p370_p0 = scmp.lt.s32.totalorder %s363_s3, %s540_s0 }
  0x12   : > { %p371_p1 = scmp.lt.s32.totalorder %s369_s7, %s364_s4 }
  0x13   : > { %p367_p12 = pnand %p366_p11, %p365_p10 }
  0x14   : > { %p372_p2 = por %p371_p1, %p370_p0 }
  0x15   : > { %p368_p13 = pneg %p367_p12 }
  0x17   : > { %p373_p3 = pnand %p372_p2, %p368_p13 }
  0x19   : > { %376 = shalt.err (!%p373_p3)
}
  0x1a   : > { %s428_s15 = smov 256   ;;  %s429_s16 = smov 16  }
  0x1b   : > { %326 = dma.hbm_to_vmem [thread:$0]  (!%p496_p8), %s123_s28, 512, %s125_s27, %s113_s30, %s428_s15, %s428_s15, %s429_s16  }
  0x1c   : > { %p132_p4 = scmp.lt.s32.totalorder %s426_s12, 5 }
  0x1e   : > { %p133_p5 = pnand %p310_p9, %p132_p4 }
  0x1f   : > { %s138_s18 = sand.u32 (!%p133_p5), 1, %s418_s10  }
  0x20   : > { %136 = sbr.rel (%p133_p5) target bundleno = 168 (0xa8), region = 24  ;;  %s311_s20 = sshll.u32 (!%p133_p5), %s138_s18, 5 }
  0x21   : > { %s139_s21 = scalar_lea.sflag (!%p133_p5), [#allocation3], %s138_s18  ;;  %s142_s22 = scalar_lea.vmem (!%p133_p5), [#allocation2], %s311_s20 }
  0x25   : > { %409 = dma.done.wait (%p485_p7), %s139_s21, 512  }
  0x26   : > { %411 = vsyncadd (%p485_p7), %s139_s21, 4294966784  ;;  %v179_v0 = vld [vmem:[%s142_s22] sm:$0xff]  ;;  %v180_v1 = vld [vmem:[%s142_s22 + $0x8] sm:$0xff]  ;;  %p169_p6 = scmp.lt.s32.totalorder %s464_s13, 3  ;;  %vm189_vm0 = vcmask 7168  }
  0x27   : > { %v192_v2 = vmul.f32 %v179_v0, %v179_v0  ;;  %v193_v3 = vmul.f32 %v180_v1, %v180_v1  ;;  %v183_v4 = vadd.f32 %v180_v1, %v179_v0  ;;  %v181_v5 = vld [vmem:[%s142_s22 + $0x10] sm:$0xff]  ;;  %v182_v6 = vld [vmem:[%s142_s22 + $0x18] sm:$0xff] }
  0x28   : > { %v194_v8 = vmul.f32 %v181_v5, %v181_v5  ;;  %v195_v9 = vmul.f32 %v182_v6, %v182_v6  ;;  %v186_v10 = vadd.f32 %v182_v6, %v181_v5  ;;  %s551_s13 = smov (!%p169_p6, %s464_s13), 3 }
  0x29   : > { %v196_v7 = vadd.f32 %v193_v3, %v192_v2  ;;  %184 = vadd.xlane.f32.xlu0 %v183_v4  ;;  %s319_s12 = sshll.u32 %s551_s13, 4 }
  0x2a   : > { %v199_v11 = vadd.f32 %v195_v9, %v194_v8  ;;  %s173_s24 = scalar_lea.vmem %s541_s1, %s319_s12  ;;  %s178_s27 = scalar_lea.vmem %s542_s2, %s319_s12 }
  0x2b   : > { %197 = vadd.xlane.f32.xlu1 %v196_v7 }
  0x31   : > { %187 = vadd.xlane.f32.xlu0 %v186_v10 }
  0x33   : > { %200 = vadd.xlane.f32.xlu1 %v199_v11 }
  0x9c   : > { %v185_v12 = vpop.xlane.xlu0 %184 }
  0x9d   : > { %190 = vst.msk [vmem:[%s173_s24] sm:$0xff] %vm189_vm0, %v185_v12 }
  0x9e   : > { %v198_v13 = vpop.xlane.xlu1 %197 }
  0x9f   : > { %202 = vst.msk [vmem:[%s178_s27] sm:$0xff] %vm189_vm0, %v198_v13 }
  0xa4   : > { %v188_v14 = vpop.xlane.xlu0 %187 }
  0xa5   : > { %191 = vst.msk [vmem:[%s173_s24 + $0x8] sm:$0xff] %vm189_vm0, %v188_v14 }
  0xa6   : > { %v201_v15 = vpop.xlane.xlu1 %200 }
  0xa7   : > { %203 = vst.msk [vmem:[%s178_s27 + $0x8] sm:$0xff] %vm189_vm0, %v201_v15 }
  0xa8 PF: > { %p13_p7 = scmp.ge.s32.totalorder %s467_s14, 6   ;;  %s546_s9 = smov %s418_s10 }
  0xa9   : > { %s547_s10 = smov %s422_s11  ;;  %s548_s11 = smov %s477_s17 }
  0xaa   : > { %s549_s12 = smov %s467_s14  ;;  %15 = sbr.rel (!%p13_p7) target bundleno = 3 (0x3), region = 76 }
  0xaf   :  { %241 = vsyncpa [#allocation3], 1 }
  0xb0   :  { %243 = vsyncpa [#allocation3 + $0x1], 1 }

// kernel: encoder_residual_block.5
= control target key start
LH: loop header
LB: loop body
LE: loop exit
PB: predicated region body
PF: predicated region fallthrough
CT: control target
= control target key end

     0   :  { %11 = vsyncpa [#allocation3], 0  ;;  %s967_s0 = inlined_call_operand.vmem [shape: f32[4,16,256], index: 0, kind: input, shape index: {}]   ;;  %s968_s1 = inlined_call_operand.vmem [shape: f32[4,16,256], index: 1, kind: input, shape index: {}]   ;;  %s969_s2 = inlined_call_operand.vmem [shape: f32[16,1], index: 2, kind: input, shape index: {}]   ;;  %s970_s3 = inlined_call_operand.vmem [shape: f32[16,1], index: 3, kind: input, shape index: {}]   ;;  %s971_s4 = inlined_call_operand.vmem [shape: bf16[16,48], index: 4, kind: input, shape index: {}]   ;;  %s972_s5 = inlined_call_operand.vmem [shape: f32[16,1], index: 5, kind: input, shape index: {}]   ;;  %s973_s6 = inlined_call_operand.hbm [shape: f32[4,16,256], index: 6, kind: output, shape index: {}]  }
   0x1   :  { %13 = vsyncpa [#allocation3 + $0x1], 0  ;;  %s818_s21 = smov 0   ;;  %s820_s22 = smov 0  }
   0x2   :  { %s822_s23 = smov 0   ;;  %s824_s24 = smov 0  }
   0x3 LB: > { %s839_s25 = sadd.s32 4294967295, %s776_s24   ;;  %s591_s26 = sadd.s32 4294967294, %s776_s24   ;;  %s776_s24 = sphi %s824_s24, %s983_s24   ;;  %s772_s23 = sphi %s822_s23, %s982_s23   ;;  %s768_s22 = sphi %s820_s22, %s981_s22   ;;  %s764_s21 = sphi %s818_s21, %s980_s21  }
   0x4   : > { %s843_s27 = sadd.s32 1, %s776_s24   ;;  %s162_s28 = sadd.s32 1, %s772_s23 }
   0x5   : > { %s159_s29 = ssub.s32 %s776_s24, %s843_s27  ;;  %p172_p0 = scmp.ne.s32.totalorder %s772_s23, %s768_s22 }
   0x6   : > { %p160_p1 = scmp.eq.s32.totalorder %s159_s29, 0  ;;  %p173_p2 = scmp.eq.s32.totalorder %s839_s25, 3 }
   0x7   : > { %p178_p3 = scmp.ne.s32.totalorder %s768_s22, %s764_s21  ;;  %p179_p4 = scmp.eq.s32.totalorder %s591_s26, 3 }
   0x8   : > { %s854_s30 = scalar_select %p160_p1, %s772_s23, %s162_s28  }
   0x9   : > { %p856_p5 = por %p173_p2, %p172_p0  ;;  %p860_p6 = por %p179_p4, %p178_p3 }
   0xa   : > { %p594_p7 = scmp.ge.s32.totalorder %s776_s24, 1  ;;  %p225_p8 = scmp.lt.s32.totalorder %s776_s24, 5 }
   0xc   : > { %p226_p9 = pnand %p594_p7, %p225_p8 }
   0xd   : > { %p260_p10 = scmp.lt.s32.totalorder (!%p226_p9), %s839_s25, 3  ;;  %s779_s28 = smov (!%p226_p9), 1  }
   0xe   : > { %229 = sbr.rel (%p226_p9) target bundleno = 451 (0x1c3), region = 44  ;;  %s780_s29 = smov (!%p226_p9), 127  }
   0xf   : > { %s257_s15 = sand.u32 (!%p226_p9), 1, %s768_s22   ;;  %s734_s19 = scalar_lea.hbm (!%p226_p9), %s973_s6, 128 }
  0x10   : > { %s502_s11 = scalar_lea.sflag (!%p226_p9), [#allocation3], %s257_s15 }
  0x13   : > { %v277_v0 = vld [vmem:[%s970_s3] sm:$0xff]  ;;  %v778_v2 = vmov 0   ;;  %v278_v3 = vld [vmem:[%s970_s3 + $0x8] sm:$0xff]  ;;  %s880_s17 = scalar_select %p260_p10, %s839_s25, 3 }
  0x14   : > { %v275_v1 = vld [vmem:[%s969_s2] sm:$0xff]  ;;  %676 = vset.pattern.permute.xlu1 %v778_v2  ;;  %675 = vset.pattern.permute.xlu0 %v778_v2  ;;  %v276_v4 = vld [vmem:[%s969_s2 + $0x8] sm:$0xff] }
  0x15   : > { %299 = vperm.xlu1 %676, %v277_v0   ;;  %285 = vperm.xlu0 %675, %v275_v1   ;;  %s625_s18 = sshll.u32 %s880_s17, 5 }
  0x16   : > { %697 = vset.pattern.permute.xlu2 %v778_v2  ;;  %s269_s26 = scalar_lea.vmem %s968_s1, %s625_s18  ;;  %s264_s20 = scalar_lea.vmem %s967_s0, %s625_s18 }
  0x17   : > { %v271_v5 = vld [vmem:[%s269_s26] sm:$0xff]  ;;  %v272_v6 = vld [vmem:[%s269_s26 + $0x8] sm:$0xff]  ;;  %v273_v15 = vld [vmem:[%s269_s26 + $0x10] sm:$0xff] }
  0x18   : > { %v274_v16 = vld [vmem:[%s269_s26 + $0x18] sm:$0xff]  ;;  %s595_s26 = sshll.u32 %s257_s15, 5 }
  0x1d   : > { %304 = vperm.xlu1 %676, %v278_v3   ;;  %290 = vperm.xlu0 %675, %v276_v4  }
  0x87   : > { %v300_v7 = vpop.permute.xlu1 %299  ;;  %v286_v8 = vpop.permute.xlu0 %285 }
  0x88   : > { %v293_v9 = vmul.f32 %v286_v8, %v271_v5  ;;  %v294_v10 = vmul.f32 %v286_v8, %v272_v6 }
  0x8a   : > { %v888_v11 = vadd.f32 %v300_v7, %v293_v9  ;;  %v890_v12 = vadd.f32 %v300_v7, %v294_v10 }
  0x8c   : > { %v600_v13 = vmul.f32 -1.442695, %v888_v11  ;;  %v601_v14 = vmul.f32 -1.442695, %v890_v12 }
  0x8e   : > { %698 = vpow2.f32 %v600_v13 }
  0x8f   : > { %700 = vpow2.f32 %v601_v14  ;;  %v291_v17 = vpop.permute.xlu0 %290  ;;  %v305_v20 = vpop.permute.xlu1 %304 }
  0x90   : > { %v295_v18 = vmul.f32 %v291_v17, %v273_v15  ;;  %v296_v19 = vmul.f32 %v291_v17, %v274_v16 }
  0x92   : > { %v894_v21 = vadd.f32 %v305_v20, %v295_v18  ;;  %v896_v22 = vadd.f32 %v305_v20, %v296_v19 }
  0x94   : > { %v699_v23 = vpop.eup %698  ;;  %v602_v24 = vmul.f32 -1.442695, %v894_v21  ;;  %v603_v27 = vmul.f32 -1.442695, %v896_v22 }
  0x95   : > { %v701_v25 = vpop.eup %700  ;;  %v323_v26 = vadd.f32 1.0, %v699_v23 }
  0x96   : > { %v324_v28 = vadd.f32 1.0, %v701_v25  ;;  %702 = vpow2.f32 %v602_v24 }
  0x97   : > { %704 = vrcp.f32 %v323_v26  ;;  %vm332_vm1 = vweird.f32 %v323_v26  ;;  %v336_v44 = vand.u32 2147483647, %v323_v26  ;;  %v338_v45 = vand.u32 2147483648, %v323_v26 }
  0x98   : > { %706 = vrcp.f32 %v324_v28  ;;  %vm347_vm2 = vweird.f32 %v324_v28  ;;  %v351_v47 = vand.u32 2147483647, %v324_v28  ;;  %v353_v52 = vand.u32 2147483648, %v324_v28 }
  0x99   : > { %708 = vpow2.f32 %v603_v27  ;;  %vm337_vm6 = vcmp.eq.f32.partialorder %v336_v44, 8.507059e+37  ;;  %v339_v57 = vor.u32 1.1754944e-38, %v338_v45 }
  0x9a   : > { %v354_v3 = vor.u32 1.1754944e-38, %v353_v52  ;;  %vm352_vm12 = vcmp.eq.f32.partialorder %v351_v47, 8.507059e+37 }
  0x9c   : > { %v703_v29 = vpop.eup %702 }
  0x9d   : > { %v705_v30 = vpop.eup %704  ;;  %v325_v31 = vadd.f32 1.0, %v703_v29 }
  0x9e   : > { %v707_v32 = vpop.eup %706  ;;  %v328_v33 = vmul.f32 %v705_v30, %v323_v26  ;;  %vm333_vm0 = vweird.f32 %v705_v30 }
  0x9f   : > { %v709_v34 = vpop.eup %708  ;;  %v343_v35 = vmul.f32 %v707_v32, %v324_v28  ;;  %710 = vrcp.f32 %v325_v31  ;;  %v368_v49 = vand.u32 2147483648, %v325_v31  ;;  %vm900_vm3 = vmor %vm332_vm1, %vm333_vm0  ;;  %vm348_vm4 = vweird.f32 %v707_v32 }
  0xa0   : > { %v329_v36 = vsub.f32 1.0, %v328_v33  ;;  %v326_v37 = vadd.f32 1.0, %v709_v34  ;;  %v366_v56 = vand.u32 2147483647, %v325_v31  ;;  %vm362_vm7 = vweird.f32 %v325_v31  ;;  %vm907_vm8 = vmor %vm347_vm2, %vm348_vm4 }
  0xa1   : > { %v344_v38 = vsub.f32 1.0, %v343_v35  ;;  %v369_v61 = vor.u32 1.1754944e-38, %v368_v49 }
  0xa2   : > { %v330_v39 = vmul.f32 %v705_v30, %v329_v36  ;;  %712 = vrcp.f32 %v326_v37  ;;  %v381_v62 = vand.u32 2147483647, %v326_v37  ;;  %v383_v63 = vand.u32 2147483648, %v326_v37 }
  0xa3   : > { %v345_v41 = vmul.f32 %v707_v32, %v344_v38  ;;  %vm367_vm11 = vcmp.eq.f32.partialorder %v366_v56, 8.507059e+37  ;;  %vm377_vm13 = vweird.f32 %v326_v37 }
  0xa4   : > { %v331_v42 = vadd.f32 %v705_v30, %v330_v39  ;;  %v384_v9 = vor.u32 1.1754944e-38, %v383_v63  ;;  %vm382_vm15 = vcmp.eq.f32.partialorder %v381_v62, 8.507059e+37 }
  0xa5   : > { %v711_v40 = vpop.eup %710  ;;  %v346_v51 = vadd.f32 %v707_v32, %v345_v41 }
  0xa6   : > { %v358_v43 = vmul.f32 %v711_v40, %v325_v31  ;;  %v335_v54 = vsel %vm900_vm3, %v705_v30, %v331_v42  ;;  %vm363_vm5 = vweird.f32 %v711_v40 }
  0xa7   : > { %v340_v0 = vsel %vm337_vm6, %v339_v57, %v335_v54  ;;  %v350_v1 = vsel %vm907_vm8, %v707_v32, %v346_v51  ;;  %vm364_vm9 = vmor %vm362_vm7, %vm363_vm5  ;;  %vm453_vm6 = vcmask 392192   ;;  %v485_v54 = vld [vmem:[%s264_s20] sm:$0xff] }
  0xa8   : > { %v713_v46 = vpop.eup %712  ;;  %v359_v48 = vsub.f32 1.0, %v358_v43  ;;  %v355_v7 = vsel %vm352_vm12, %v354_v3, %v350_v1  ;;  %v387_v8 = vmul.f32 %v340_v0, %v888_v11  ;;  %v282_v11 = vld [vmem:[%s972_s5 + $0x8] sm:$0xff]  ;;  %v487_v1 = vld [vmem:[%s264_s20 + $0x10] sm:$0xff] }
  0xa9   : > { %v373_v53 = vmul.f32 %v713_v46, %v326_v37  ;;  %vm378_vm10 = vweird.f32 %v713_v46  ;;  %v388_v17 = vmul.f32 %v355_v7, %v890_v12  ;;  %v281_v12 = vld [vmem:[%s972_s5] sm:$0xff] }
  0xaa   : > { %v360_v55 = vmul.f32 %v711_v40, %v359_v48  ;;  %vm379_vm14 = vmor %vm377_vm13, %vm378_vm10  ;;  %v627_v48 = vld [vmem:[%s971_s4] sm:$0xff] }
  0xab   : > { %v374_v58 = vsub.f32 1.0, %v373_v53 }
  0xac   : > { %v361_v60 = vadd.f32 %v711_v40, %v360_v55  ;;  %v486_v55 = vld [vmem:[%s264_s20 + $0x8] sm:$0xff] }
  0xad   : > { %v375_v2 = vmul.f32 %v713_v46, %v374_v58 }
  0xae   : > { %v365_v4 = vsel %vm364_vm9, %v711_v40, %v361_v60 }
  0xaf   : > { %v370_v5 = vsel %vm367_vm11, %v369_v61, %v365_v4  ;;  %v376_v6 = vadd.f32 %v713_v46, %v375_v2  ;;  %v488_v2 = vld [vmem:[%s264_s20 + $0x18] sm:$0xff] }
  0xb0   : > { %v389_v10 = vmul.f32 %v370_v5, %v894_v21  ;;  %v391_v21 = vlaneseq }
  0xb1   : > { %v380_v13 = vsel %vm379_vm14, %v713_v46, %v376_v6 }
  0xb2   : > { %v385_v14 = vsel %vm382_vm15, %v384_v9, %v380_v13  ;;  %v687_v15 = vpack.i.bf16 %v389_v10, %v387_v8  ;;  %v434_v16 = vpack.c.bf16 %v389_v10, %v387_v8  ;;  %v392_v24 = vand.u32 127, %v391_v21 }
  0xb3   : > { %v390_v18 = vmul.f32 %v385_v14, %v896_v22 }
  0xb4   : > { %688 = vrot.lane.b32.xlu0 %v687_v15, %s779_s28  ;;  %678 = vrot.lane.b32.xlu2 %v687_v15, %s780_s29  ;;  %v393_v25 = vadd.s32 128, %v392_v24  ;;  %vm423_vm0 = vcmp.lt.s32.totalorder %v392_v24, 127  ;;  %vm404_vm3 = vcmp.lt.s32.totalorder %v392_v24, 1  ;;  %vm629_vm4 = vcmp.ne.s32.totalorder %v392_v24, 0 }
  0xb5   : > { %v692_v19 = vpack.i.bf16 %v390_v18, %v388_v17  ;;  %v435_v20 = vpack.c.bf16 %v390_v18, %v388_v17  ;;  %vm610_vm5 = vmpackc.low %vm629_vm4, %vm629_vm4 }
  0xb6   : > { %vm630_vm1 = vcmp.ne.s32.totalorder %v393_v25, 255 }
  0xb7   : > { %693 = vrot.lane.b32.xlu1 %v692_v19, %s779_s28  ;;  %vm616_vm2 = vmpackc.low %vm630_vm1, %vm630_vm1  ;;  %s628_s28 = sshll.u32 %s839_s25, 5 }
  0xb8   : > { %s513_s18 = scalar_lea.hbm %s973_s6, %s628_s28 }
  0xb9   : > { %s516_s25 = sshll.u32 %s513_s18, 4  ;;  %s517_s25 = int_to_ptr.hbm [resolvable:$true] %s516_s25 }
  0xba   : > { %s728_s12 = sshra.s32 %s517_s25, 4  ;;  %s729_s12 = int_to_ptr.hbm [resolvable:$true] %s728_s12 }
  0xbb   : > { %s730_s13 = scalar_lea.hbm %s729_s12, 32  ;;  %p735_p0 = scmp.lt.s32.totalorder %s729_s12, %s973_s6 }
  0xbc   : > { %445 = vperm.xlu0 %675, %v282_v11   ;;  %683 = vrot.lane.b32.xlu2 %v692_v19, %s780_s29  ;;  %s259_s29 = scalar_lea.vmem [#allocation2], %s595_s26  ;;  %p731_p11 = scmp.ne.s32.totalorder %s729_s12, %s730_s13 }
  0xbd   : > { %s514_s10 = sshll.u32 %s259_s29, 4  ;;  %p736_p1 = scmp.lt.s32.totalorder %s734_s19, %s730_s13  ;;  %s515_s10 = int_to_ptr.vmem [resolvable:$true] %s514_s10 }
  0xbe   : > { %p732_p12 = pnand %p731_p11, %p856_p5 }
  0xbf   : > { %p737_p2 = por %p736_p1, %p735_p0 }
  0xc0   : > { %p733_p13 = pneg %p732_p12 }
  0xc2   : > { %p738_p3 = pnand %p737_p2, %p733_p13 }
  0xc4   : > { %440 = vperm.xlu2 %697, %v281_v12  }
 0x10e   : > { %v679_v23 = vpop.permute.xlu2 %678 }
 0x10f   : > { %v681_v26 = vunpack.i.h.bf16 %v679_v23  ;;  %v680_v27 = vunpack.i.l.bf16 %v679_v23 }
 0x116   : > { %v684_v22 = vpop.permute.xlu2 %683 }
 0x117   : > { %v686_v28 = vunpack.i.h.bf16 %v684_v22  ;;  %v685_v29 = vunpack.i.l.bf16 %v684_v22 }
 0x119   : > { %v424_v30 = vsel %vm423_vm0, %v680_v27, %v685_v29  ;;  %v425_v31 = vsel %vm423_vm0, %v681_v26, %v686_v28  ;;  %v426_v32 = vsel %vm423_vm0, %v685_v29, %v680_v27  ;;  %v427_v33 = vsel %vm423_vm0, %v686_v28, %v681_v26 }
 0x11a   : > { %v436_v34 = vpack.c.bf16 %v425_v31, %v424_v30  ;;  %v617_v35 = vpack.c.bf16 %v427_v33, %v426_v32 }
 0x11c   : > { %462 = vmatpush.bf16.msra.mxu0 %v436_v34  ;;  %618 = vmatpush.bf16.msk.msra.mxu1 %vm616_vm2, %v617_v35 }
 0x11e   : > { %v441_v49 = vpop.permute.xlu2 %440 }
 0x120   : > { %463 = vmatpush.bf16.msra.mxu0 %v434_v16  ;;  %477 = vmatpush.bf16.msra.mxu1 %v435_v20 }
 0x126   : > { %v689_v36 = vpop.permute.xlu0 %688 }
 0x127   : > { %v691_v37 = vunpack.i.h.bf16 %v689_v36  ;;  %v690_v38 = vunpack.i.l.bf16 %v689_v36 }
 0x129   : > { %v694_v39 = vpop.permute.xlu1 %693 }
 0x12a   : > { %v696_v40 = vunpack.i.h.bf16 %v694_v39  ;;  %v695_v41 = vunpack.i.l.bf16 %v694_v39 }
 0x12c   : > { %v407_v42 = vsel %vm404_vm3, %v695_v41, %v690_v38  ;;  %v408_v43 = vsel %vm404_vm3, %v696_v40, %v691_v37  ;;  %v405_v44 = vsel %vm404_vm3, %v690_v38, %v695_v41  ;;  %v406_v45 = vsel %vm404_vm3, %v691_v37, %v696_v40 }
 0x12d   : > { %v611_v46 = vpack.c.bf16 %v408_v43, %v407_v42  ;;  %v433_v47 = vpack.c.bf16 %v406_v45, %v405_v44 }
 0x12e   : > { %v446_v60 = vpop.permute.xlu0 %445 }
 0x12f   : > { %612 = vmatpush.bf16.msk.msra.mxu0 %vm610_vm5, %v611_v46  ;;  %478 = vmatpush.bf16.msra.mxu1 %v433_v47 }
 0x132   : > { %613 = vmatmul.msk.bf16.vlgmr.msra.gmra.mxu0 %vm453_vm6, %v627_v48  ;;  %619 = vmatmul.msk.bf16.vlgmr.msra.gmra.mxu1 %vm453_vm6, %v627_v48 }
 0x1af   : > { %v466_v50 = vpop.f32.mrf.mxu0  ;;  %v480_v51 = vpop.f32.mrf.mxu1 }
 0x1b0   : > { %v467_v52 = vadd.f32 %v466_v50, %v441_v49  ;;  %v481_v53 = vadd.f32 %v480_v51, %v441_v49 }
 0x1b2   : > { %v489_v56 = vmul.f32 0.1, %v467_v52  ;;  %v490_v57 = vmul.f32 0.1, %v481_v53 }
 0x1b4   : > { %v493_v58 = vadd.f32 %v489_v56, %v485_v54  ;;  %v494_v59 = vadd.f32 %v490_v57, %v486_v55 }
 0x1b6   : > { %497 = vst [vmem:[%s259_s29] sm:$0xff] %v493_v58 }
 0x1b7   : > { %498 = vst [vmem:[%s259_s29 + $0x8] sm:$0xff] %v494_v59  ;;  %v468_v61 = vpop.f32.mrf.mxu0  ;;  %v482_v62 = vpop.f32.mrf.mxu1 }
 0x1b8   : > { %v469_v63 = vadd.f32 %v468_v61, %v446_v60  ;;  %v483_v0 = vadd.f32 %v482_v62, %v446_v60 }
 0x1ba   : > { %v491_v3 = vmul.f32 0.1, %v469_v63  ;;  %v492_v4 = vmul.f32 0.1, %v483_v0 }
 0x1bc   : > { %v495_v5 = vadd.f32 %v491_v3, %v487_v1  ;;  %v496_v6 = vadd.f32 %v492_v4, %v488_v2 }
 0x1be   : > { %499 = vst [vmem:[%s259_s29 + $0x10] sm:$0xff] %v495_v5 }
 0x1bf   : > { %500 = vst [vmem:[%s259_s29 + $0x18] sm:$0xff] %v496_v6 }
 0x1c0   : > { %741 = shalt.err (!%p738_p3)
}
 0x1c1   : > { %s781_s15 = smov 256   ;;  %s782_s28 = smov 16  }
 0x1c2   : > { %631 = dma.vmem_to_hbm [thread:$0]  (%p856_p5), %s515_s10, 512, %s517_s25, %s502_s11, %s781_s15, %s781_s15, %s782_s28  }
 0x1c3 PF: > { %p637_p4 = scmp.ge.s32.totalorder %s776_s24, 2  ;;  %s531_s29 = sand.u32 1, %s764_s21  }
 0x1c4   : > { %s532_s17 = scalar_lea.sflag [#allocation3], %s531_s29 }
 0x1c5   : > { %p634_p7 = pnand %p637_p4, %p860_p6 }
 0x1c7   : > { %p635_p8 = pneg %p634_p7 }
 0x1c9   : > { %759 = dma.done.wait (%p635_p8), %s532_s17, 512  }
 0x1ca   : > { %761 = vsyncadd (%p635_p8), %s532_s17, 4294966784  ;;  %p16_p9 = scmp.ge.s32.totalorder %s843_s27, 6   ;;  %s980_s21 = smov %s768_s22 }
 0x1cb   : > { %s981_s22 = smov %s772_s23  ;;  %s982_s23 = smov %s854_s30 }
 0x1cc   : > { %s983_s24 = smov %s843_s27  ;;  %18 = sbr.rel (!%p16_p9) target bundleno = 3 (0x3), region = 82 }
 0x1d1   :  { %538 = vsyncpa [#allocation3], 1 }
 0x1d2   :  { %540 = vsyncpa [#allocation3 + $0x1], 1 }

</bundles_post_ra>
